<compile_context>
chip_gen: v6e
topology: v6e:2x2x1
jax: 0.10.0
libtpu: 0.0.40
codegen_flags: <defaults>
</compile_context>

<pallas_src>
import jax
import jax.numpy as jnp
from jax.experimental import pallas as pl
from jax.experimental.pallas import tpu as pltpu


def _copy_kernel(x_ref, o_ref):
    # Identity forward: straight VMEM copy of the current block.
    o_ref[...] = x_ref[...]


def model_forward(x):
    """Optimized Model.forward: identity. No kernel launch — XLA elides it."""
    return x


def model_forward_pallas(x):
    """Framework-parity Pallas identity kernel (aliased, tiled when large)."""
    orig_shape = x.shape
    # Collapse to 2-D, keeping the last dim on lanes.
    x2 = x.reshape(-1, x.shape[-1]) if x.ndim >= 2 else x.reshape(1, -1)
    M, N = x2.shape

    TM = 512
    if M > TM and M % TM == 0:
        # Large input: row-tiled, parallel grid -> shards across TCs and
        # double-buffers HBM<->VMEM at the bandwidth roofline.  Tile bytes
        # stay far below v7x's 64 MiB VMEM for any sane N.
        grid = (M // TM,)
        in_specs = [pl.BlockSpec((TM, N), lambda i: (i, 0))]
        out_specs = pl.BlockSpec((TM, N), lambda i: (i, 0))
        compiler_params = pltpu.CompilerParams(
            dimension_semantics=("parallel",))
    else:
        # Tiny input (e.g. (8, 2)): single full-array block, single step.
        grid = ()
        in_specs = [pl.BlockSpec((M, N), lambda: (0, 0))]
        out_specs = pl.BlockSpec((M, N), lambda: (0, 0))
        compiler_params = pltpu.CompilerParams()

    y2 = pl.pallas_call(
        _copy_kernel,
        out_shape=jax.ShapeDtypeStruct((M, N), x2.dtype),
        grid=grid,
        in_specs=in_specs,
        out_specs=out_specs,
        # Output buffer is the input buffer: no extra HBM writeback allocation.
        input_output_aliases={0: 0},
        compiler_params=compiler_params,
    )(x2)
    return y2.reshape(orig_shape)


def init_params(key):
    """Deterministic init of the (unused-in-forward) Linear(2, 1) parameters."""
    k_w, k_b = jax.random.split(key)
    # Match torch.nn.Linear(2, 1): weight [1, 2], bias [1].
    bound = 1.0 / jnp.sqrt(2.0)
    weight = jax.random.uniform(k_w, (1, 2), jnp.float32, -bound, bound)
    bias = jax.random.uniform(k_b, (1,), jnp.float32, -bound, bound)
    return {"linear": {"weight": weight, "bias": bias}}


if __name__ == "__main__":
    key = jax.random.PRNGKey(0)
    k_params, k_x = jax.random.split(key)

    params = init_params(k_params)  # parity with nn.Linear(2, 1); unused in forward

    # Small input consistent with the module: batch=8, features=2.
    x = jax.random.normal(k_x, (8, 2), dtype=jnp.float32)

    # Optimized forward: identity, no kernel launch.
    y_fast = model_forward(x)
    jax.block_until_ready(y_fast)

    # Framework-parity Pallas kernel path (run once, validated).
    y_kern = model_forward_pallas(x)
    jax.block_until_ready(y_kern)

    assert y_fast.shape == x.shape and y_fast.dtype == x.dtype
    assert y_kern.shape == x.shape and y_kern.dtype == x.dtype
    assert bool(jnp.all(y_fast == x))
    assert bool(jnp.all(y_kern == x))
    print("KERNEL_OK")
</pallas_src>

<mosaic_0001>
module attributes {stable_mosaic.version = 11 : i64} {
  func.func @_copy_kernel(%arg0: memref<8x2xf32, #tpu.memory_space<vmem>>, %arg1: memref<8x2xf32, #tpu.memory_space<vmem>>) attributes {dimension_semantics = [], scalar_prefetch = 0 : i64, scratch_operands = 0 : i64, tpu.core_type = #tpu.core_type<tc>} {
    %c0 = arith.constant 0 : index
    %c0_0 = arith.constant 0 : index
    %0 = vector.load %arg0[%c0, %c0_0] : memref<8x2xf32, #tpu.memory_space<vmem>>, vector<8x2xf32>
    %c0_1 = arith.constant 0 : index
    %c0_2 = arith.constant 0 : index
    %1 = vector.load %arg1[%c0_1, %c0_2] : memref<8x2xf32, #tpu.memory_space<vmem>>, vector<8x2xf32>
    tpu.vector_store %arg1[%c0_1, %c0_2], %0 {strides = array<i32>} : memref<8x2xf32, #tpu.memory_space<vmem>>, vector<8x2xf32>,
    return
  }
}

</mosaic_0001>

<bundles_post_ra>
// kernel: tpu_custom_call.1
= control target key start
LH: loop header
LB: loop body
LE: loop exit
PB: predicated region body
PF: predicated region fallthrough
CT: control target
= control target key end

     0   :  { %vm9_vm0 = vcmask 15360   ;;  %s31_s0 = inlined_call_operand.vmem [shape: f32[8,2], index: 0, kind: input, shape index: {}, may-alias: {0,1}]   ;;  %s32_s1 = inlined_call_operand.vmem [shape: f32[8,2], index: 1, kind: output, shape index: {}, may-alias: {0,1}]  }
   0x1   :  { %v8_v0 = vld [vmem:[%s31_s0] sm:$0xff] }
   0x2   :  { %10 = vst.msk [vmem:[%s32_s1] sm:$0xff] %vm9_vm0, %v8_v0 }

</bundles_post_ra>
